<compile_context>
chip_gen: v6e
topology: v6e:2x2x1
jax: 0.10.0
libtpu: 0.0.40
codegen_flags: <defaults>
</compile_context>

<pallas_src>
import math
import functools

import jax
import jax.numpy as jnp
from jax import lax
from jax.experimental import pallas as pl
from jax.experimental.pallas import tpu as pltpu

LN_EPS = 1e-5                      # torch.nn.LayerNorm default
_VMEM_LIMIT = 48 * 1024 * 1024     # > default scoped limit (16/32 MiB), < v7x physical


def _pick_tile(dim, candidates=(512, 256, 128)):
    """Largest 128-aligned tile that divides `dim`, else the full dim
    (full dims always satisfy the (8,128) BlockSpec constraint)."""
    for t in candidates:
        if dim >= t and dim % t == 0:
            return t
    return dim


# --------------------- fused stacked projection matmul ---------------------
# x2d (M, K)  @  w_stack (P, K, N)  ->  (P, M, N)   (P = 1, 2 or 3 projections)

def _fused_proj_kernel(x_ref, w_ref, o_ref, acc_ref):
    @pl.when(pl.program_id(3) == 0)
    def _():
        acc_ref[...] = jnp.zeros_like(acc_ref)

    acc_ref[...] += jnp.dot(x_ref[...].astype(w_ref.dtype), w_ref[0],
                            preferred_element_type=jnp.float32)

    @pl.when(pl.program_id(3) == pl.num_programs(3) - 1)
    def _():
        o_ref[0] = acc_ref[...].astype(o_ref.dtype)


def _fused_proj(x2d, w_stack):
    M, K = x2d.shape
    P, _, N = w_stack.shape
    tm, tn, tk = _pick_tile(M), _pick_tile(N), _pick_tile(K)
    cost = pl.CostEstimate(
        flops=2 * P * M * N * K, transcendentals=0,
        bytes_accessed=int(M * K * x2d.dtype.itemsize
                           + P * K * N * w_stack.dtype.itemsize
                           + P * M * N * x2d.dtype.itemsize))
    return pl.pallas_call(
        _fused_proj_kernel,
        out_shape=jax.ShapeDtypeStruct((P, M, N), x2d.dtype),
        grid_spec=pltpu.PrefetchScalarGridSpec(
            num_scalar_prefetch=0,
            grid=(P, M // tm, N // tn, K // tk),
            in_specs=[pl.BlockSpec((tm, tk), lambda p, i, j, k: (i, k)),
                      pl.BlockSpec((1, tk, tn), lambda p, i, j, k: (p, k, j))],
            out_specs=pl.BlockSpec((1, tm, tn), lambda p, i, j, k: (p, i, j)),
            scratch_shapes=[pltpu.VMEM((tm, tn), jnp.float32)]),
        compiler_params=pltpu.CompilerParams(
            dimension_semantics=("parallel", "parallel", "parallel", "arbitrary"),
            vmem_limit_bytes=_VMEM_LIMIT),
        cost_estimate=cost,
    )(x2d, w_stack)


# ----------------------------- masked attention -----------------------------
# q/k/v are read straight out of the stacked projection outputs via BlockSpec
# index_maps on the leading stack axis (no JAX-level qkv slicing).

def _attn_kernel(lens_ref, q_ref, k_ref, v_ref, o_ref, acc_ref, *,
                 num_heads, scale, causal, tq, kv_offset, mxu_dtype):
    b = pl.program_id(0)
    qi = pl.program_id(1)
    q = q_ref[0, 0]                      # (tq, D)
    k = k_ref[0, 0]                      # (Tk, D)
    v = v_ref[0, 0]                      # (Tk, D)
    Tk, D = k.shape
    d = D // num_heads

    key_idx = lax.broadcasted_iota(jnp.int32, (tq, Tk), 1)
    mask = key_idx < lens_ref[b]                         # per-batch valid length (SMEM)
    if causal:
        q_idx = lax.broadcasted_iota(jnp.int32, (tq, Tk), 0) + qi * tq
        mask = jnp.logical_and(mask, key_idx <= q_idx + kv_offset)

    # TODO(synk): for long-context v7x decode, add Tk-block online softmax (flash)
    # and a head-major (B,H,T,d) projection layout so per-head tiles are lane-dense
    # without the in-kernel lane slices below.
    for h in range(num_heads):           # static unroll over heads (small)
        qh = q[:, h * d:(h + 1) * d].astype(mxu_dtype)
        kh = k[:, h * d:(h + 1) * d].astype(mxu_dtype)
        vh = v[:, h * d:(h + 1) * d].astype(mxu_dtype)
        s = lax.dot_general(qh, kh, (((1,), (1,)), ((), ())),
                            preferred_element_type=jnp.float32) * scale
        s = jnp.where(mask, s, -1e6)     # d2l masked_softmax convention
        m = jnp.max(s, axis=-1, keepdims=True)
        e = jnp.exp(s - m)
        p = e * pl.reciprocal(jnp.sum(e, axis=-1, keepdims=True), approx=True)
        # write this head's result straight at its lane offset (no concat epilogue)
        acc_ref[:, h * d:(h + 1) * d] = jnp.dot(p.astype(mxu_dtype), vh,
                                                preferred_element_type=jnp.float32)
    o_ref[0] = acc_ref[...].astype(o_ref.dtype)          # single lane-dense store


def _masked_attention(q_stack, kv_stack, lens, num_heads, causal,
                      q_idx, k_idx, v_idx, mxu_dtype):
    _, B, Tq, D = q_stack.shape
    Tk = kv_stack.shape[2]
    tq = _pick_tile(Tq)
    scale = 1.0 / math.sqrt(D // num_heads)
    kern = functools.partial(_attn_kernel, num_heads=num_heads, scale=scale,
                             causal=causal, tq=tq, kv_offset=Tk - Tq,
                             mxu_dtype=mxu_dtype)
    cost = pl.CostEstimate(
        flops=4 * B * Tq * Tk * D,
        transcendentals=B * Tq * Tk + B * Tq,
        bytes_accessed=int(4 * (2 * B * Tq * D + 2 * B * Tk * D)))
    return pl.pallas_call(
        kern,
        out_shape=jax.ShapeDtypeStruct((B, Tq, D), q_stack.dtype),
        grid_spec=pltpu.PrefetchScalarGridSpec(
            num_scalar_prefetch=1,       # valid_lens -> SMEM (no VMEM mask stream)
            grid=(B, Tq // tq),
            in_specs=[
                pl.BlockSpec((1, 1, tq, D), lambda b, qi, lens: (q_idx, b, qi, 0)),
                pl.BlockSpec((1, 1, Tk, D), lambda b, qi, lens: (k_idx, b, 0, 0)),
                pl.BlockSpec((1, 1, Tk, D), lambda b, qi, lens: (v_idx, b, 0, 0)),
            ],
            out_specs=pl.BlockSpec((1, tq, D), lambda b, qi, lens: (b, qi, 0)),
            scratch_shapes=[pltpu.VMEM((tq, D), jnp.float32)]),
        compiler_params=pltpu.CompilerParams(
            dimension_semantics=("parallel", "parallel"),
            vmem_limit_bytes=_VMEM_LIMIT),
        cost_estimate=cost,
    )(lens.astype(jnp.int32), q_stack, kv_stack, kv_stack)


# ------------------- fused Wo-projection + residual + LayerNorm -------------------

def _proj_addnorm_kernel(a_ref, w_ref, x_ref, g_ref, b_ref, o_ref):
    proj = jnp.dot(a_ref[...].astype(w_ref.dtype), w_ref[...],
                   preferred_element_type=jnp.float32)
    s = x_ref[...].astype(jnp.float32) + proj
    mu = jnp.mean(s, axis=-1, keepdims=True)
    var = jnp.mean(jnp.square(s - mu), axis=-1, keepdims=True)
    y = (s - mu) * lax.rsqrt(var + LN_EPS)
    o_ref[...] = (y * g_ref[...] + b_ref[...]).astype(o_ref.dtype)


def _proj_add_norm(attn2d, wo, x2d, gamma, beta):
    M, D = x2d.shape
    K = attn2d.shape[1]
    tm = _pick_tile(M)
    cost = pl.CostEstimate(
        flops=2 * M * K * D + 8 * M * D, transcendentals=M,
        bytes_accessed=int(4 * M * (K + 2 * D) + K * D * wo.dtype.itemsize))
    return pl.pallas_call(
        _proj_addnorm_kernel,
        out_shape=jax.ShapeDtypeStruct((M, D), x2d.dtype),
        grid=(M // tm,),
        in_specs=[pl.BlockSpec((tm, K), lambda i: (i, 0)),
                  pl.BlockSpec((K, D), lambda i: (0, 0)),   # bf16 weight, resident
                  pl.BlockSpec((tm, D), lambda i: (i, 0)),
                  pl.BlockSpec((1, D), lambda i: (0, 0)),
                  pl.BlockSpec((1, D), lambda i: (0, 0))],
        out_specs=pl.BlockSpec((tm, D), lambda i: (i, 0)),
        compiler_params=pltpu.CompilerParams(
            dimension_semantics=("parallel",),
            vmem_limit_bytes=_VMEM_LIMIT),
        cost_estimate=cost,
    )(attn2d, wo, x2d, gamma, beta)


# ---------------------- fused FFN + residual + LayerNorm ----------------------

def _ffn_addnorm_kernel(x_ref, w1_ref, b1_ref, w2_ref, b2_ref, g_ref, bb_ref,
                        o_ref, *, h_chunk):
    x = x_ref[...]
    xb = x.astype(w1_ref.dtype)
    tm, D = x.shape
    H = w1_ref.shape[1]
    f = jnp.zeros((tm, D), jnp.float32)
    # hidden dim processed in chunks: no (tm, H) f32 intermediate materialized
    for j in range(H // h_chunk):
        lo, hi = j * h_chunk, (j + 1) * h_chunk
        h = jnp.dot(xb, w1_ref[:, lo:hi], preferred_element_type=jnp.float32)
        h = jnp.maximum(h + b1_ref[:, lo:hi], 0.0)            # ReLU in f32
        f = f + jnp.dot(h.astype(w2_ref.dtype), w2_ref[lo:hi, :],
                        preferred_element_type=jnp.float32)
    s = x.astype(jnp.float32) + f + b2_ref[...]
    mu = jnp.mean(s, axis=-1, keepdims=True)
    var = jnp.mean(jnp.square(s - mu), axis=-1, keepdims=True)
    y = (s - mu) * lax.rsqrt(var + LN_EPS)
    o_ref[...] = (y * g_ref[...] + bb_ref[...]).astype(o_ref.dtype)


def _ffn_add_norm(x2d, ffn, ln):
    M, D = x2d.shape
    H = ffn["W1"].shape[1]
    tm = _pick_tile(M)
    h_chunk = _pick_tile(H)
    cost = pl.CostEstimate(
        flops=4 * M * D * H + 10 * M * D, transcendentals=M,
        bytes_accessed=int(8 * M * D + 2 * D * H * ffn["W1"].dtype.itemsize))
    return pl.pallas_call(
        functools.partial(_ffn_addnorm_kernel, h_chunk=h_chunk),
        out_shape=jax.ShapeDtypeStruct((M, D), x2d.dtype),
        grid=(M // tm,),
        in_specs=[pl.BlockSpec((tm, D), lambda i: (i, 0)),
                  pl.BlockSpec((D, H), lambda i: (0, 0)),   # bf16 weights resident
                  pl.BlockSpec((1, H), lambda i: (0, 0)),
                  pl.BlockSpec((H, D), lambda i: (0, 0)),
                  pl.BlockSpec((1, D), lambda i: (0, 0)),
                  pl.BlockSpec((1, D), lambda i: (0, 0)),
                  pl.BlockSpec((1, D), lambda i: (0, 0))],
        out_specs=pl.BlockSpec((tm, D), lambda i: (i, 0)),
        compiler_params=pltpu.CompilerParams(
            dimension_semantics=("parallel",),
            vmem_limit_bytes=_VMEM_LIMIT),
        cost_estimate=cost,
    )(x2d, ffn["W1"], ffn["b1"], ffn["W2"], ffn["b2"], ln["g"], ln["b"])


# ----------------------------- JAX glue -----------------------------

def _mha_core(queries, kv, lens, p, num_heads, causal, *, share_qkv):
    """Multi-head attention core (no Wo projection -- fused downstream)."""
    B, Tq, _ = queries.shape
    D = p["Wo"].shape[0]
    mxu = p["Wo"].dtype
    if share_qkv:
        # self-attention, no cache: single fused Q|K|V projection; output stays
        # stacked as (3, B, T, D) -- attention BlockSpecs pick q/k/v by stack index.
        qkv = _fused_proj(queries.reshape(B * Tq, -1), p["Wqkv"]).reshape(3, B, Tq, D)
        return _masked_attention(qkv, qkv, lens, num_heads, causal, 0, 1, 2, mxu)
    Tk = kv.shape[1]
    q = _fused_proj(queries.reshape(B * Tq, -1), p["Wq1"]).reshape(1, B, Tq, D)
    kvp = _fused_proj(kv.reshape(B * Tk, -1), p["Wkv"]).reshape(2, B, Tk, D)
    return _masked_attention(q, kvp, lens, num_heads, causal, 0, 0, 1, mxu)


def _attention_sublayer(residual, queries, kv, lens, p, ln, num_heads, causal,
                        *, share_qkv):
    B, T, D = residual.shape
    attn = _mha_core(queries, kv, lens, p, num_heads, causal, share_qkv=share_qkv)
    out = _proj_add_norm(attn.reshape(B * T, D), p["Wo"],
                         residual.reshape(B * T, D), ln["g"], ln["b"])
    return out.reshape(B, T, D)


def decoder_block_forward(X, state, params, *, num_heads, block_idx=0, training=True):
    enc_output, enc_valid_lens = state[0], state[1]
    if state[2][block_idx] is None:
        key_values = X
        share_qkv = True          # explicit flag instead of fragile `kv is queries`
    else:
        # TODO(synk): cache *projected* K/V in a preallocated max-length buffer and
        # update it in place (input_output_aliases + dynamic-slice stores) so each
        # decode step projects only the new token instead of the whole history.
        key_values = jnp.concatenate([state[2][block_idx], X], axis=1)
        share_qkv = False
    state[2][block_idx] = key_values

    B, T, D = X.shape
    Tkv = key_values.shape[1]
    self_lens = jnp.full((B,), Tkv, dtype=jnp.int32)
    # training: dec_valid_lens = arange(1, T+1) per row == causal mask (static);
    # inference: torch valid_lens=None -> unmasked softmax (full length).
    causal = bool(training)

    Y = _attention_sublayer(X, X, key_values, self_lens,
                            params["attn1"], params["ln1"], num_heads, causal,
                            share_qkv=share_qkv)
    Z = _attention_sublayer(Y, Y, enc_output, enc_valid_lens.astype(jnp.int32),
                            params["attn2"], params["ln2"], num_heads, causal=False,
                            share_qkv=False)
    out = _ffn_add_norm(Z.reshape(B * T, D), params["ffn"],
                        params["ln3"]).reshape(B, T, D)
    return out, state


# ----------------------------- parameters -----------------------------

def init_params(key, *, key_size, query_size, value_size, num_proj, num_heads,
                num_hidden, norm_dim):
    """f32 master parameters (same init as torch.nn.Linear / LayerNorm defaults)."""
    D = num_proj * num_heads
    ks = jax.random.split(key, 12)

    def lin_w(k, fan_in, fan_out):
        bound = 1.0 / math.sqrt(fan_in)
        return jax.random.uniform(k, (fan_in, fan_out), jnp.float32, -bound, bound)

    def lin_b(k, fan_in, fan_out):
        bound = 1.0 / math.sqrt(fan_in)
        return jax.random.uniform(k, (1, fan_out), jnp.float32, -bound, bound)

    ln = lambda: {"g": jnp.ones((1, norm_dim), jnp.float32),
                  "b": jnp.zeros((1, norm_dim), jnp.float32)}
    return {
        "attn1": {"Wq": lin_w(ks[0], query_size, D), "Wk": lin_w(ks[1], key_size, D),
                  "Wv": lin_w(ks[2], value_size, D), "Wo": lin_w(ks[3], D, D)},
        "attn2": {"Wq": lin_w(ks[4], query_size, D), "Wk": lin_w(ks[5], key_size, D),
                  "Wv": lin_w(ks[6], value_size, D), "Wo": lin_w(ks[7], D, D)},
        "ln1": ln(), "ln2": ln(), "ln3": ln(),
        "ffn": {"W1": lin_w(ks[8], D, num_hidden), "b1": lin_b(ks[9], D, num_hidden),
                "W2": lin_w(ks[10], num_hidden, D), "b2": lin_b(ks[11], num_hidden, D)},
    }


def prepare_params(master, mxu_dtype=jnp.bfloat16):
    """One-time weight prep (hoisted out of the per-call path): stack Q|K|V and
    K|V projections and cast all MXU weights to `mxu_dtype` (biases/LN stay f32)."""
    def prep_attn(a):
        return {
            "Wqkv": jnp.stack([a["Wq"], a["Wk"], a["Wv"]], axis=0).astype(mxu_dtype),
            "Wq1":  a["Wq"][None].astype(mxu_dtype),
            "Wkv":  jnp.stack([a["Wk"], a["Wv"]], axis=0).astype(mxu_dtype),
            "Wo":   a["Wo"].astype(mxu_dtype),
        }
    return {
        "attn1": prep_attn(master["attn1"]),
        "attn2": prep_attn(master["attn2"]),
        "ln1": master["ln1"], "ln2": master["ln2"], "ln3": master["ln3"],
        "ffn": {"W1": master["ffn"]["W1"].astype(mxu_dtype), "b1": master["ffn"]["b1"],
                "W2": master["ffn"]["W2"].astype(mxu_dtype), "b2": master["ffn"]["b2"]},
    }


# ----------------------------- pure-JAX reference -----------------------------

def _ref_split(x, num_heads):
    B, T, D = x.shape
    d = D // num_heads
    return x.reshape(B, T, num_heads, d).transpose(0, 2, 1, 3).reshape(B * num_heads, T, d)


def _ref_merge(x, num_heads):
    BH, T, d = x.shape
    B = BH // num_heads
    return x.reshape(B, num_heads, T, d).transpose(0, 2, 1, 3).reshape(B, T, num_heads * d)


def _ref_mha(queries, keys, values, valid_lens_bt, p, num_heads):
    prec = lax.Precision.HIGHEST
    Tk = keys.shape[1]
    D = p["Wq"].shape[1]
    d = D // num_heads
    q = _ref_split(jnp.einsum("btd,de->bte", queries, p["Wq"], precision=prec), num_heads)
    k = _ref_split(jnp.einsum("btd,de->bte", keys, p["Wk"], precision=prec), num_heads)
    v = _ref_split(jnp.einsum("btd,de->bte", values, p["Wv"], precision=prec), num_heads)
    scores = jnp.einsum("bqd,bkd->bqk", q, k, precision=prec) / math.sqrt(d)
    vl = jnp.repeat(valid_lens_bt.astype(jnp.int32), num_heads, axis=0)[:, :, None]
    scores = jnp.where(jnp.arange(Tk)[None, None, :] < vl, scores, -1e6)
    pa = jax.nn.softmax(scores, axis=-1)
    out = _ref_merge(jnp.einsum("bqk,bkd->bqd", pa, v, precision=prec), num_heads)
    return jnp.einsum("btd,de->bte", out, p["Wo"], precision=prec)


def _ref_addnorm(x, y, g, b):
    s = x + y
    mu = s.mean(-1, keepdims=True)
    var = ((s - mu) ** 2).mean(-1, keepdims=True)
    return (s - mu) / jnp.sqrt(var + LN_EPS) * g.reshape(-1) + b.reshape(-1)


def _ref_forward(X, enc_output, enc_valid_lens, params, num_heads):
    prec = lax.Precision.HIGHEST
    B, T, D = X.shape
    dec_vl = jnp.tile(jnp.arange(1, T + 1, dtype=jnp.int32), (B, 1))
    X2 = _ref_mha(X, X, X, dec_vl, params["attn1"], num_heads)
    Y = _ref_addnorm(X, X2, params["ln1"]["g"], params["ln1"]["b"])
    enc_vl_bt = jnp.broadcast_to(enc_valid_lens.astype(jnp.int32)[:, None], (B, T))
    Y2 = _ref_mha(Y, enc_output, enc_output, enc_vl_bt, params["attn2"], num_heads)
    Z = _ref_addnorm(Y, Y2, params["ln2"]["g"], params["ln2"]["b"])
    h = jnp.maximum(jnp.einsum("btd,dh->bth", Z, params["ffn"]["W1"], precision=prec)
                    + params["ffn"]["b1"].reshape(-1), 0.0)
    F = (jnp.einsum("bth,hd->btd", h, params["ffn"]["W2"], precision=prec)
         + params["ffn"]["b2"].reshape(-1))
    return _ref_addnorm(Z, F, params["ln3"]["g"], params["ln3"]["b"])


# ----------------------------- main -----------------------------

if __name__ == "__main__":
    B, T, num_heads, num_proj = 2, 8, 2, 8
    D = num_heads * num_proj          # embed dim = 16
    num_hidden = 32
    T_enc = 8

    key = jax.random.PRNGKey(0)
    k_x, k_enc, k_p = jax.random.split(key, 3)
    X = jax.random.normal(k_x, (B, T, D), jnp.float32)
    enc_output = jax.random.normal(k_enc, (B, T_enc, D), jnp.float32)
    enc_valid_lens = jnp.array([5, 8], dtype=jnp.int32)

    master = init_params(k_p, key_size=D, query_size=D, value_size=D,
                         num_proj=num_proj, num_heads=num_heads,
                         num_hidden=num_hidden, norm_dim=D)
    params_bf16 = prepare_params(master, jnp.bfloat16)   # production (bf16 MXU) path
    params_f32 = prepare_params(master, jnp.float32)     # exact-dtype logic check

    ref = _ref_forward(X, enc_output, enc_valid_lens, master, num_heads)

    # bf16-MXU production path (state = [enc_output, enc_valid_lens, kv cache])
    state = [enc_output, enc_valid_lens, [None]]
    out, state = decoder_block_forward(X, state, params_bf16, num_heads=num_heads,
                                       block_idx=0, training=True)
    out = jax.block_until_ready(out)
    assert out.shape == (B, T, D)
    assert state[2][0].shape == (B, T, D)

    # f32-operand path: tight check that the kernel logic matches the reference
    state32 = [enc_output, enc_valid_lens, [None]]
    out32, _ = decoder_block_forward(X, state32, params_f32, num_heads=num_heads,
                                     block_idx=0, training=True)
    out32 = jax.block_until_ready(out32)

    err32 = float(jnp.max(jnp.abs(out32 - ref)))
    errbf = float(jnp.max(jnp.abs(out - ref)))
    assert jnp.allclose(out32, ref, atol=1e-2, rtol=1e-2), err32
    # bf16 MXU operands vs f32 reference: looser (but meaningful) tolerance
    assert jnp.allclose(out, ref, atol=5e-2, rtol=5e-2), errbf
    print("KERNEL_OK")
</pallas_src>

<mosaic_0001>
module attributes {stable_mosaic.version = 11 : i64} {
  func.func @_fused_proj_kernel(%arg0: i32, %arg1: i32, %arg2: i32, %arg3: i32, %arg4: memref<16x16xf32, #tpu.memory_space<vmem>>, %arg5: memref<1x16x16xbf16, #tpu.memory_space<vmem>>, %arg6: memref<1x16x16xf32, #tpu.memory_space<vmem>>, %arg7: memref<16x16xf32, #tpu.memory_space<vmem>>) attributes {dimension_semantics = [#tpu.dimension_semantics<parallel>, #tpu.dimension_semantics<parallel>, #tpu.dimension_semantics<parallel>, #tpu.dimension_semantics<arbitrary>], iteration_bounds = array<i64: 3, 1, 1, 1>, scalar_prefetch = 0 : i64, scratch_operands = 1 : i64, tpu.core_type = #tpu.core_type<tc>, window_params = [{transform_indices = @transform_0, window_bounds = array<i64: 16, 16>}, {transform_indices = @transform_1, window_bounds = array<i64: 1, 16, 16>}, {transform_indices = @transform_2, window_bounds = array<i64: 1, 16, 16>}]} {
    %c0_i32 = arith.constant 0 : i32
    %0 = arith.cmpi eq, %arg3, %c0_i32 : i32
    %1 = arith.extui %0 : i1 to i32
    %c0_i32_0 = arith.constant 0 : i32
    %2 = arith.cmpi ne, %1, %c0_i32_0 : i32
    scf.if %2 {
      %cst_11 = arith.constant 0.000000e+00 : f32
      %14 = vector.broadcast %cst_11 : f32 to vector<16x16xf32>
      %c0_12 = arith.constant 0 : index
      %c0_13 = arith.constant 0 : index
      %15 = vector.load %arg7[%c0_12, %c0_13] : memref<16x16xf32, #tpu.memory_space<vmem>>, vector<16x16xf32>
      tpu.vector_store %arg7[%c0_12, %c0_13], %14 {strides = array<i32>} : memref<16x16xf32, #tpu.memory_space<vmem>>, vector<16x16xf32>,
    } else {
    }
    %c0 = arith.constant 0 : index
    %c0_1 = arith.constant 0 : index
    %3 = vector.load %arg7[%c0, %c0_1] : memref<16x16xf32, #tpu.memory_space<vmem>>, vector<16x16xf32>
    %c0_2 = arith.constant 0 : index
    %c0_3 = arith.constant 0 : index
    %4 = vector.load %arg4[%c0_2, %c0_3] : memref<16x16xf32, #tpu.memory_space<vmem>>, vector<16x16xf32>
    %5 = arith.truncf %4 : vector<16x16xf32> to vector<16x16xbf16>
    %c0_4 = arith.constant 0 : index
    %c0_5 = arith.constant 0 : index
    %c0_6 = arith.constant 0 : index
    %6 = vector.load %arg5[%c0_4, %c0_5, %c0_6] : memref<1x16x16xbf16, #tpu.memory_space<vmem>>, vector<1x16x16xbf16>
    %7 = vector.shape_cast %6 : vector<1x16x16xbf16> to vector<16x16xbf16>
    %cst = arith.constant dense<0.000000e+00> : vector<16x16xf32>
    %8 = tpu.matmul %5, %7, %cst {dimension_numbers = #tpu.dot_dimension_numbers<[1], [0], [0], [1], [0, 0, 1, 1], [], []>} : vector<16x16xbf16>, vector<16x16xbf16>, vector<16x16xf32> -> vector<16x16xf32>
    %9 = arith.addf %3, %8 : vector<16x16xf32>
    %c0_7 = arith.constant 0 : index
    %c0_8 = arith.constant 0 : index
    %10 = vector.load %arg7[%c0_7, %c0_8] : memref<16x16xf32, #tpu.memory_space<vmem>>, vector<16x16xf32>
    tpu.vector_store %arg7[%c0_7, %c0_8], %9 {strides = array<i32>} : memref<16x16xf32, #tpu.memory_space<vmem>>, vector<16x16xf32>,
    %c0_i32_9 = arith.constant 0 : i32
    %11 = arith.cmpi eq, %arg3, %c0_i32_9 : i32
    %12 = arith.extui %11 : i1 to i32
    %c0_i32_10 = arith.constant 0 : i32
    %13 = arith.cmpi ne, %12, %c0_i32_10 : i32
    scf.if %13 {
      %c0_11 = arith.constant 0 : index
      %c0_12 = arith.constant 0 : index
      %14 = vector.load %arg7[%c0_11, %c0_12] : memref<16x16xf32, #tpu.memory_space<vmem>>, vector<16x16xf32>
      %c0_13 = arith.constant 0 : index
      %c0_14 = arith.constant 0 : index
      %c0_15 = arith.constant 0 : index
      %15 = vector.load %arg6[%c0_13, %c0_14, %c0_15] : memref<1x16x16xf32, #tpu.memory_space<vmem>>, vector<1x16x16xf32>
      %16 = vector.shape_cast %15 : vector<1x16x16xf32> to vector<16x16xf32>
      %17 = vector.shape_cast %14 : vector<16x16xf32> to vector<1x16x16xf32>
      tpu.vector_store %arg6[%c0_13, %c0_14, %c0_15], %17 {strides = array<i32>} : memref<1x16x16xf32, #tpu.memory_space<vmem>>, vector<1x16x16xf32>,
    } else {
    }
    return
  }
  func.func @transform_0(%arg0: i32, %arg1: i32, %arg2: i32, %arg3: i32) -> (i32, i32) {
    %c0_i32 = arith.constant 0 : i32
    return %arg1, %arg3 : i32, i32
  }
  func.func @transform_1(%arg0: i32, %arg1: i32, %arg2: i32, %arg3: i32) -> (i32, i32, i32) {
    %c0_i32 = arith.constant 0 : i32
    return %arg0, %arg3, %arg2 : i32, i32, i32
  }
  func.func @transform_2(%arg0: i32, %arg1: i32, %arg2: i32, %arg3: i32) -> (i32, i32, i32) {
    %c0_i32 = arith.constant 0 : i32
    return %arg0, %arg1, %arg2 : i32, i32, i32
  }
}

</mosaic_0001>

<bundles_post_ra>
// kernel: tpu_custom_call.1
= control target key start
LH: loop header
LB: loop body
LE: loop exit
PB: predicated region body
PF: predicated region fallthrough
CT: control target
= control target key end

     0   :  { %7 = vsyncpa [#allocation4], 0  ;;  %s897_s0 = inlined_call_operand.hbm [shape: f32[16,16], index: 0, kind: input, shape index: {}]   ;;  %s898_s1 = inlined_call_operand.hbm [shape: bf16[3,16,16], index: 1, kind: input, shape index: {}]   ;;  %s899_s2 = inlined_call_operand.hbm [shape: f32[3,16,16], index: 2, kind: output, shape index: {}]  }
   0x1   :  { %8 = vsyncpa [#allocation7], 0 }
   0x2   :  { %10 = vsyncpa [#allocation7 + $0x1], 0 }
   0x3   :  { %11 = vsyncpa [#allocation5], 0 }
   0x4   :  { %13 = vsyncpa [#allocation5 + $0x1], 0  ;;  %s710_s9 = smov 0   ;;  %s712_s10 = smov 0  }
   0x5   :  { %s714_s11 = smov 0   ;;  %s716_s12 = smov 0  }
   0x6   :  { %s718_s13 = smov 0   ;;  %s720_s14 = smov 0  }
   0x7 LB: > { %s433_s15 = sadd.s32 4294967295, %s682_s14   ;;  %s434_s16 = sadd.s32 4294967294, %s682_s14   ;;  %s682_s14 = sphi %s720_s14, %s19_s14   ;;  %s678_s13 = sphi %s718_s13, %s916_s13   ;;  %s674_s12 = sphi %s716_s12, %s915_s12   ;;  %s670_s11 = sphi %s714_s11, %s914_s11   ;;  %s666_s10 = sphi %s712_s10, %s913_s10   ;;  %s662_s9 = sphi %s710_s9, %s912_s9  }
   0x8   : > { %p97_p0 = scmp.ne.s32.totalorder %s666_s10, %s662_s9  ;;  %p744_p1 = scmp.eq.s32.totalorder %s433_s15, 0 }
   0x9   : > { %p748_p2 = scmp.eq.s32.totalorder %s433_s15, 2  ;;  %p131_p3 = scmp.eq.s32.totalorder %s434_s16, 2 }
   0xa   : > { %p754_p4 = por %p744_p1, %p97_p0  ;;  %p435_p5 = scmp.ge.s32.totalorder %s682_s14, 1 }
   0xb   : > { %p759_p6 = por %p131_p3, %p97_p0  ;;  %p138_p7 = scmp.lt.s32.totalorder %s682_s14, 4 }
   0xc   : > { %s684_s22 = smov [#allocation3]   ;;  %s45_s25 = sadd.s32 1, %s678_s13 }
   0xd   : > { %s904_s20 = scalar_select %p759_p6, 1, 0 }
   0xe   : > { %p764_p8 = pnand %p435_p5, %p138_p7  ;;  %s154_s23 = sshll.u32 %s684_s22, 4  ;;  %s155_s23 = int_to_ptr.vmem [resolvable:$true] %s154_s23 }
   0xf   : > { %s555_s26 = scalar_lea.vmem %s155_s23, 256  ;;  %p563_p3 = scmp.lt.s32.totalorder %s155_s23, %s155_s23 }
  0x10   : > { %p470_p9 = pneg %p764_p8  ;;  %p556_p12 = scmp.ne.s32.totalorder %s155_s23, %s555_s26 }
  0x11   : > { %p564_p5 = scmp.lt.s32.totalorder %s555_s26, %s555_s26 }
  0x12   : > { %p772_p10 = pnand %p470_p9, %p744_p1 }
  0x13   : > { %p565_p7 = por %p564_p5, %p563_p3 }
  0x14   : > { %p546_p11 = pneg %p772_p10 }
  0x16   : > { %p558_p13 = pnand %p556_p12, %p546_p11 }
  0x18   : > { %p559_p0 = pneg %p558_p13 }
  0x1a   : > { %p566_p6 = pnand %p565_p7, %p559_p0 }
  0x1c   : > { %569 = shalt.err (!%p566_p6)
}
  0x1d   : > { %s685_s27 = smov 128   ;;  %s686_s28 = smov 8  }
  0x1e   : > { %473 = dma.hbm_to_vmem [thread:$0]  (!%p772_p10), %s897_s0, 256, %s155_s23, [#allocation4], %s685_s27, %s685_s27, %s686_s28  }
  0x1f   : > { %p47_p9 = scmp.ge.s32.totalorder %s45_s25, 3  ;;  %s84_s3 = sadd.s32 1, %s670_s11 }
  0x20   : > { %p91_p6 = scmp.ne.s32.totalorder %s670_s11, %s666_s10  ;;  %p92_p11 = scmp.eq.s32.totalorder %s682_s14, 0 }
  0x21   : > { %s918_s25 = smov (%p47_p9, %s45_s25), 0  ;;  %p483_p0 = scmp.lt.s32.totalorder %s682_s14, 3 }
  0x22   : > { %p790_p12 = por %p92_p11, %p91_p6  ;;  %p796_p13 = por %p748_p2, %p91_p6 }
  0x23   : > { %s77_s6 = ssub.s32 %s678_s13, %s918_s25  ;;  %s168_s7 = sand.u32 1, %s670_s11  }
  0x24   : > { %s908_s5 = scalar_select %p796_p13, 1, 0 }
  0x25   : > { %p82_p10 = scmp.eq.s32.totalorder %s77_s6, 0  ;;  %s438_s8 = sshll.u32 %s168_s7, 3 }
  0x26   : > { %s452_s16 = sshll.u32 %s678_s13, 7  ;;  %s172_s26 = scalar_lea.vmem [#allocation6], %s438_s8 }
  0x27   : > { %s805_s15 = scalar_select %p82_p10, %s670_s11, %s84_s3  }
  0x28   : > { %s181_s24 = scalar_lea.hbm %s898_s1, %s452_s16  ;;  %s182_s27 = sshll.u32 %s172_s26, 4  ;;  %s183_s27 = int_to_ptr.vmem [resolvable:$true] %s182_s27 }
  0x29   : > { %p813_p2 = pnand %p483_p0, %p790_p12  ;;  %s169_s28 = scalar_lea.sflag [#allocation7], %s168_s7 }
  0x2a   : > { %s583_s29 = scalar_lea.vmem %s183_s27, 128  ;;  %s687_s30 = smov [#allocation6]  }
  0x2b   : > { %p572_p3 = pneg %p813_p2  ;;  %p584_p5 = scmp.ne.s32.totalorder %s183_s27, %s583_s29 }
  0x2c   : > { %s588_s3 = sshll.u32 %s687_s30, 4  ;;  %s589_s3 = int_to_ptr.vmem [resolvable:$false] %s588_s3 }
  0x2d   : > { %p586_p7 = pnand %p584_p5, %p572_p3  ;;  %s590_s6 = scalar_lea.vmem %s589_s3, 256 }
  0x2e   : > { %p591_p6 = scmp.lt.s32.totalorder %s183_s27, %s589_s3  ;;  %p592_p11 = scmp.lt.s32.totalorder %s590_s6, %s583_s29 }
  0x2f   : > { %p587_p9 = pneg %p586_p7 }
  0x30   : > { %p593_p10 = por %p592_p11, %p591_p6 }
  0x32   : > { %p594_p13 = pnand %p593_p10, %p587_p9 }
  0x34   : > { %597 = shalt.err (!%p594_p13)
}
  0x35   : > { %s688_s4 = smov 64   ;;  %s689_s8 = smov 4  }
  0x36   : > { %477 = dma.hbm_to_vmem [thread:$0]  (!%p813_p2), %s181_s24, 128, %s183_s27, %s169_s28, %s688_s4, %s688_s4, %s689_s8  }
  0x37   : > { %194 = sbr.rel (%p764_p8) target bundleno = 291 (0x123), region = 28 }
  0x3c   : > { %649 = dma.done.wait (%p744_p1), [#allocation4], 256  }
  0x3d   : > { %651 = vsyncadd (%p744_p1), [#allocation4], 4294967040  ;;  %s828_s7 = sand.u32 1, %s666_s10  }
  0x3e   : > { %s443_s16 = sshll.u32 %s828_s7, 3  ;;  %s201_s22 = scalar_lea.sflag [#allocation7], %s828_s7 }
  0x3f   : > { %s204_s23 = scalar_lea.vmem [#allocation6], %s443_s16 }
  0x40   : > { %653 = dma.done.wait (%p754_p4), %s201_s22, 128  }
  0x41   : > { %655 = vsyncadd (%p754_p4), %s201_s22, 4294967168  ;;  %vm233_vm0 = vcmask 130048   ;;  %v690_v0 = vmov 0.0   ;;  %vm691_vm1 = vmmov 0   ;;  %v543_v1 = vld [vmem:[%s204_s23] sm:$0xff]   ;;  %v238_v2 = vld [vmem:[#allocation3] sm:$0xff] }
  0x42   : > { %234 = vst.msk [vmem:[#allocation2] sm:$0xff] %vm233_vm0, %v690_v0  ;;  %235 = vst.msk [vmem:[#allocation2 + $0x8] sm:$0xff] %vm233_vm0, %v690_v0  ;;  %456 = vmatprep.subr.bf16.mxu0 %v690_v0  ;;  %458 = vmatprep.mubr.msk.bf16.mxu0 %vm691_vm1, %v690_v0  ;;  %v239_v3 = vld [vmem:[#allocation3 + $0x8] sm:$0xff]  ;;  %s444_s17 = sshll.u32 %s828_s7, 4  ;;  %s453_s19 = sshll.u32 %s674_s12, 8 }
  0x43   : > { %457 = vmatpush3.bf16.msra.mxu0 %v543_v1  ;;  %v240_v4 = vpack.c.bf16 %v239_v3, %v238_v2  ;;  %s224_s21 = scalar_lea.vmem [#allocation8], %s444_s17  ;;  %s847_s18 = scalar_lea.hbm %s899_s2, %s453_s19 }
  0x44   : > { %s322_s24 = sshll.u32 %s224_s21, 4  ;;  %s306_s28 = scalar_lea.sflag [#allocation5], %s828_s7  ;;  %s849_s24 = int_to_ptr.vmem [resolvable:$true] %s322_s24 }
  0x45   : > { %s598_s12 = scalar_lea.vmem %s849_s24, 256  ;;  %p910_p4 = scmp.ne.s32.totalorder %s908_s5, 0 }
  0x46   : > { %459 = vmatmul.mubr.msk.bf16.vlgmr.msra.gmra.mxu0 %vm233_vm0, %v240_v4  ;;  %p599_p1 = scmp.ne.s32.totalorder %s849_s24, %s598_s12  ;;  %s692_s29 = smov [#allocation8]  }
  0x47   : > { %s602_s30 = sshll.u32 %s692_s29, 4  ;;  %s603_s30 = int_to_ptr.vmem [resolvable:$false] %s602_s30 }
  0x48   : > { %p600_p8 = pnand %p599_p1, %p910_p4  ;;  %s604_s3 = scalar_lea.vmem %s603_s30, 512 }
  0x49   : > { %v236_v5 = vld [vmem:[#allocation2] sm:$0xff]  ;;  %v237_v9 = vld [vmem:[#allocation2 + $0x8] sm:$0xff]  ;;  %p605_p13 = scmp.lt.s32.totalorder %s849_s24, %s603_s30  ;;  %p606_p0 = scmp.lt.s32.totalorder %s604_s3, %s598_s12 }
  0x4a   : > { %p601_p12 = pneg %p600_p8 }
  0x4b   : > { %p607_p2 = por %p606_p0, %p605_p13 }
  0x4d   : > { %p608_p3 = pnand %p607_p2, %p601_p12 }
 0x106   : > { %v287_v6 = vpop.f32.mrf.mxu0 }
 0x107   : > { %v294_v7 = vadd.f32 %v287_v6, %v236_v5 }
 0x108   : > { %v460_v8 = vpop.f32.mrf.mxu0 }
 0x109   : > { %296 = vst.msk [vmem:[#allocation2] sm:$0xff] %vm233_vm0, %v294_v7 }
 0x10a   : > { %v290_v10 = vpop.f32.mrf.mxu0 }
 0x10b   : > { %v295_v11 = vadd.f32 %v290_v10, %v237_v9 }
 0x10c   : > { %v461_v12 = vpop.f32.mrf.mxu0 }
 0x10d   : > { %297 = vst.msk [vmem:[#allocation2 + $0x8] sm:$0xff] %vm233_vm0, %v295_v11 }
 0x110   : > { %v301_v13 = vld [vmem:[#allocation2] sm:$0xff] }
 0x111   : > { %303 = vst.msk [vmem:[%s224_s21] sm:$0xff] %vm233_vm0, %v301_v13 }
 0x114   : > { %v302_v14 = vld [vmem:[#allocation2 + $0x8] sm:$0xff] }
 0x115   : > { %304 = vst.msk [vmem:[%s224_s21 + $0x8] sm:$0xff] %vm233_vm0, %v302_v14 }
 0x116   : > { %611 = shalt.err (!%p608_p3)
}
 0x117   : > { %s612_s6 = scalar_lea.hbm %s847_s18, 256  ;;  %s616_s16 = scalar_lea.hbm %s899_s2, 768 }
 0x118   : > { %p613_p5 = scmp.ne.s32.totalorder %s847_s18, %s612_s6  ;;  %p617_p6 = scmp.lt.s32.totalorder %s847_s18, %s899_s2 }
 0x119   : > { %p618_p11 = scmp.lt.s32.totalorder %s616_s16, %s612_s6 }
 0x11a   : > { %p614_p7 = pnand %p613_p5, %p910_p4 }
 0x11b   : > { %p619_p10 = por %p618_p11, %p617_p6 }
 0x11c   : > { %p615_p9 = pneg %p614_p7 }
 0x11e   : > { %p620_p1 = pnand %p619_p10, %p615_p9 }
 0x120   : > { %623 = shalt.err (!%p620_p1)
}
 0x121   : > { %s693_s17 = smov 128   ;;  %s694_s19 = smov 8  }
 0x122   : > { %468 = dma.vmem_to_hbm [thread:$0]  (%p910_p4), %s849_s24, 256, %s847_s18, %s306_s28, %s693_s17, %s693_s17, %s694_s19  }
 0x123 PF: > { %p485_p8 = scmp.ge.s32.totalorder %s682_s14, 2  ;;  %s337_s21 = sand.u32 1, %s662_s9  }
 0x124   : > { %p911_p12 = scmp.ne.s32.totalorder %s904_s20, 0  ;;  %s338_s26 = scalar_lea.sflag [#allocation5], %s337_s21 }
 0x126   : > { %p479_p13 = pnand %p485_p8, %p911_p12 }
 0x128   : > { %p480_p0 = pneg %p479_p13 }
 0x12a   : > { %657 = dma.done.wait (%p480_p0), %s338_s26, 256  }
 0x12b   : > { %659 = vsyncadd (%p480_p0), %s338_s26, 4294967040  ;;  %s19_s14 = sadd.s32 1, %s682_s14   ;;  %s912_s9 = smov %s666_s10 }
 0x12c   : > { %p16_p2 = scmp.ge.s32.totalorder %s19_s14, 5   ;;  %s913_s10 = smov %s670_s11 }
 0x12d   : > { %s914_s11 = smov %s805_s15  ;;  %s915_s12 = smov %s678_s13 }
 0x12e   : > { %s916_s13 = smov %s918_s25  ;;  %18 = sbr.rel (!%p16_p2) target bundleno = 7 (0x7), region = 87 }
 0x133   :  { %343 = vsyncpa [#allocation4], 1 }
 0x134   :  { %345 = vsyncpa [#allocation4 + $0x1], 1 }
 0x135   :  { %346 = vsyncpa [#allocation7], 1 }
 0x136   :  { %348 = vsyncpa [#allocation7 + $0x1], 1 }
 0x137   :  { %349 = vsyncpa [#allocation5], 1 }
 0x138   :  { %351 = vsyncpa [#allocation5 + $0x1], 1 }

</bundles_post_ra>
